<compile_context>
chip_gen: v5e
topology: v5e:2x2
jax: 0.10.0
libtpu: 0.0.40
codegen_flags: <defaults>
</compile_context>

<pallas_src>
import functools

import jax
import jax.numpy as jnp
from jax.experimental import pallas as pl
from jax.experimental.pallas import tpu as pltpu


def _round_up(a: int, b: int) -> int:
    return ((a + b - 1) // b) * b


def _default_block_tokens() -> int:
    try:
        kind = jax.devices()[0].device_kind.lower()
    except Exception:
        return 512
    if "v6" in kind or "trillium" in kind:
        return 1024     # v6e: ~680+ tokens per weight pass needed for MXU-bound
    return 512          # v5e / v7x


def _vmem_capacity_bytes() -> int:
    try:
        return int(pltpu.get_tpu_info().vmem_capacity_bytes)
    except Exception:
        return 64 << 20  # conservative fallback (v7x per-core size)


def _pick_ffn_tile(F: int, block_ffn: int):
    """ffn tile (multiple of 128); prefers a divisor of F so weights need no pad."""
    F128 = _round_up(F, 128)
    tf = max(128, min(_round_up(block_ffn, 128), F128))
    if F % 128 == 0:
        for cand in range(tf, 127, -128):
            if F % cand == 0:
                return cand, F           # no weight padding needed
    return tf, _round_up(F, tf)          # ragged F (never at Mixtral scale)


def _mixtral_mlp_kernel(x_ref, w1_ref, w3_ref, w2_ref, o_ref, acc_ref, *, nf: int):
    """One (token-tile, ffn-tile) step: partial = (SiLU(x@w1) * (x@w3)) @ w2."""
    x = x_ref[...]                                                       # (tm, H)
    h1 = jnp.dot(x, w1_ref[...], preferred_element_type=jnp.float32)    # (tm, tf)
    h3 = jnp.dot(x, w3_ref[...], preferred_element_type=jnp.float32)    # (tm, tf)
    gated = (h1 * jax.nn.sigmoid(h1)) * h3                              # SiLU * up
    partial = jnp.dot(gated.astype(w2_ref.dtype), w2_ref[...],
                      preferred_element_type=jnp.float32)               # (tm, H)

    if nf == 1:
        # Single ffn tile: write the result directly, no accumulator round-trip.
        o_ref[...] = partial.astype(o_ref.dtype)
    else:
        j = pl.program_id(1)

        @pl.when(j == 0)
        def _():
            acc_ref[...] = partial

        @pl.when(jnp.logical_and(j > 0, j < nf - 1))
        def _():
            acc_ref[...] += partial

        # Fused flush: skip the extra (tm, H) f32 RMW + copy on the last step.
        @pl.when(j == nf - 1)
        def _():
            o_ref[...] = (acc_ref[...] + partial).astype(o_ref.dtype)


@functools.partial(jax.jit, static_argnames=("tm", "tf", "F_pad"))
def _mixtral_mlp_impl(x, w1_t, w3_t, w2_t, *, tm: int, tf: int, F_pad: int):
    T, H = x.shape
    F = w1_t.shape[1]
    T_pad = _round_up(T, tm)
    nf = F_pad // tf
    ni = T_pad // tm

    # Zero padding is inert: SiLU(0) * 0 == 0 and zero w2 rows add nothing.
    x_p = x if T_pad == T else jnp.pad(x, ((0, T_pad - T), (0, 0)))
    if F_pad != F:  # only when F is not a multiple of 128 (never at Mixtral scale)
        w1_t = jnp.pad(w1_t, ((0, 0), (0, F_pad - F)))
        w3_t = jnp.pad(w3_t, ((0, 0), (0, F_pad - F)))
        w2_t = jnp.pad(w2_t, ((0, F_pad - F), (0, 0)))

    wbytes = jnp.dtype(w1_t.dtype).itemsize
    xbytes = jnp.dtype(x.dtype).itemsize

    # VMEM budget: 2-deep-pipelined weight slabs + x/out tiles + f32 accumulator,
    # clamped to the hardware capacity minus headroom (not a fixed 64 MiB cap).
    need = 2 * 3 * H * tf * wbytes                 # w1 / w3 / w2 slabs, double-buffered
    need += 4 * tm * H * xbytes                    # x + out tiles, double-buffered
    need += tm * H * 4 if nf > 1 else 0            # f32 accumulator scratch
    vmem_cap = _vmem_capacity_bytes()
    vmem_limit = max(32 << 20, min(int(need * 1.15) + (6 << 20), vmem_cap - (4 << 20)))

    cost = pl.CostEstimate(
        flops=6 * T_pad * H * F_pad,                               # 3 matmuls
        transcendentals=T_pad * F_pad,                             # sigmoid
        bytes_accessed=ni * 3 * H * F_pad * wbytes + 2 * T_pad * H * xbytes,
    )

    kernel = functools.partial(_mixtral_mlp_kernel, nf=nf)
    acc_shape = (tm, H) if nf > 1 else (8, 128)    # scratch unused when nf == 1

    out = pl.pallas_call(
        kernel,
        out_shape=jax.ShapeDtypeStruct((T_pad, H), x.dtype),
        grid_spec=pltpu.PrefetchScalarGridSpec(
            num_scalar_prefetch=0,
            grid=(ni, nf),                                    # reduction axis last
            in_specs=[
                pl.BlockSpec((tm, H), lambda i, j: (i, 0)),   # x token tile
                pl.BlockSpec((H, tf), lambda i, j: (0, j)),   # w1.T slab
                pl.BlockSpec((H, tf), lambda i, j: (0, j)),   # w3.T slab
                pl.BlockSpec((tf, H), lambda i, j: (j, 0)),   # w2.T slab
            ],
            out_specs=pl.BlockSpec((tm, H), lambda i, j: (i, 0)),
            scratch_shapes=[pltpu.VMEM(acc_shape, jnp.float32)],
        ),
        compiler_params=pltpu.CompilerParams(
            dimension_semantics=("parallel", "arbitrary"),
            vmem_limit_bytes=vmem_limit,
        ),
        cost_estimate=cost,
    )(x_p, w1_t, w3_t, w2_t)

    # TODO(synk): v7x decode (single token tile) leaves one TensorCore idle; split
    # the ffn reduction across the two cores (per-core partial f32 accumulators +
    # a tiny combining add) instead of duplicating the up-projection.
    return out[:T] if T_pad != T else out


def mixtral_mlp(x, w1_t, w3_t, w2_t, *, block_tokens=None, block_ffn=None):
    """Mixtral expert MLP forward.

    x:    (T, H)          activations
    w1_t: (H, F) = W1.T   gate projection (PyTorch (out,in) weight, transposed)
    w3_t: (H, F) = W3.T   up projection
    w2_t: (F, H) = W2.T   down projection
    returns (T, H)
    """
    T, H = x.shape
    xbytes = jnp.dtype(x.dtype).itemsize
    T_pad8 = _round_up(max(T, 1), 8)

    if block_tokens is None:
        # Small-T fast path: if x, out and the f32 accumulator fit comfortably in
        # VMEM, use ONE token tile so the weights stream from HBM exactly once.
        if T_pad8 * H * (4 * xbytes + 4) <= (32 << 20):
            tm = T_pad8
        else:
            tm = min(_default_block_tokens(), T_pad8)
    else:
        tm = min(block_tokens, T_pad8)
    tm = _round_up(tm, 8)

    tf, F_pad = _pick_ffn_tile(w1_t.shape[1], 512 if block_ffn is None else block_ffn)
    return _mixtral_mlp_impl(x, w1_t, w3_t, w2_t, tm=tm, tf=tf, F_pad=F_pad)


def _reference(x, w1_t, w3_t, w2_t):
    h1 = x @ w1_t
    h3 = x @ w3_t
    return (jax.nn.silu(h1) * h3) @ w2_t


if __name__ == "__main__":
    key = jax.random.PRNGKey(0)

    # --- Case 1: small module-spec shapes (single grid step, nf == 1 path). ---
    T, H, F = 8, 32, 64
    kx, k1, k2, k3 = jax.random.split(key, 4)
    x = jax.random.normal(kx, (T, H), jnp.float32)
    # PyTorch weights are (out, in); pass the transpose so x @ W.T matches.
    w1 = jax.random.normal(k1, (F, H), jnp.float32) * 0.05
    w3 = jax.random.normal(k3, (F, H), jnp.float32) * 0.05
    w2 = jax.random.normal(k2, (H, F), jnp.float32) * 0.05

    out = mixtral_mlp(x, w1.T, w3.T, w2.T)
    jax.block_until_ready(out)
    ref = _reference(x, w1.T, w3.T, w2.T)
    assert out.shape == (T, H)
    assert jnp.allclose(out, ref, atol=1e-4, rtol=1e-4), "case 1 mismatch"

    # --- Case 2: ragged T + explicit small tiles (multi token tile + accumulation). ---
    T2, H2, F2 = 40, 128, 384
    kx2, k12, k22, k32 = jax.random.split(jax.random.PRNGKey(1), 4)
    x2 = jax.random.normal(kx2, (T2, H2), jnp.float32)
    w1b = jax.random.normal(k12, (F2, H2), jnp.float32) * 0.02
    w3b = jax.random.normal(k32, (F2, H2), jnp.float32) * 0.02
    w2b = jax.random.normal(k22, (H2, F2), jnp.float32) * 0.02

    out2 = mixtral_mlp(x2, w1b.T, w3b.T, w2b.T, block_tokens=16, block_ffn=128)
    jax.block_until_ready(out2)
    ref2 = _reference(x2, w1b.T, w3b.T, w2b.T)
    assert out2.shape == (T2, H2)
    assert jnp.allclose(out2, ref2, atol=1e-4, rtol=1e-4), "case 2 mismatch"

    # --- Case 3: auto-tiled small-T fast path with a multi-tile ffn reduction. ---
    T3, H3, F3 = 24, 256, 512
    kx3, k13, k23, k33 = jax.random.split(jax.random.PRNGKey(2), 4)
    x3 = jax.random.normal(kx3, (T3, H3), jnp.float32)
    w1c = jax.random.normal(k13, (F3, H3), jnp.float32) * 0.02
    w3c = jax.random.normal(k33, (F3, H3), jnp.float32) * 0.02
    w2c = jax.random.normal(k23, (H3, F3), jnp.float32) * 0.02

    out3 = mixtral_mlp(x3, w1c.T, w3c.T, w2c.T, block_ffn=256)
    jax.block_until_ready(out3)
    ref3 = _reference(x3, w1c.T, w3c.T, w2c.T)
    assert out3.shape == (T3, H3)
    assert jnp.allclose(out3, ref3, atol=1e-4, rtol=1e-4), "case 3 mismatch"

    print("KERNEL_OK")
</pallas_src>

<mosaic_0001>
module attributes {stable_mosaic.version = 11 : i64} {
  func.func @_mixtral_mlp_kernel(%arg0: i32, %arg1: i32, %arg2: memref<8x32xf32, #tpu.memory_space<vmem>>, %arg3: memref<32x128xf32, #tpu.memory_space<vmem>>, %arg4: memref<32x128xf32, #tpu.memory_space<vmem>>, %arg5: memref<128x32xf32, #tpu.memory_space<vmem>>, %arg6: memref<8x32xf32, #tpu.memory_space<vmem>>, %arg7: memref<8x128xf32, #tpu.memory_space<vmem>>) attributes {dimension_semantics = [#tpu.dimension_semantics<parallel>, #tpu.dimension_semantics<arbitrary>], iteration_bounds = array<i64: 1, 1>, scalar_prefetch = 0 : i64, scratch_operands = 1 : i64, tpu.core_type = #tpu.core_type<tc>, window_params = [{transform_indices = @transform_0, window_bounds = array<i64: 8, 32>}, {transform_indices = @transform_1, window_bounds = array<i64: 32, 128>}, {transform_indices = @transform_2, window_bounds = array<i64: 32, 128>}, {transform_indices = @transform_3, window_bounds = array<i64: 128, 32>}, {transform_indices = @transform_4, window_bounds = array<i64: 8, 32>}]} {
    %c0 = arith.constant 0 : index
    %c0_0 = arith.constant 0 : index
    %0 = vector.load %arg2[%c0, %c0_0] : memref<8x32xf32, #tpu.memory_space<vmem>>, vector<8x32xf32>
    %c0_1 = arith.constant 0 : index
    %c0_2 = arith.constant 0 : index
    %1 = vector.load %arg3[%c0_1, %c0_2] : memref<32x128xf32, #tpu.memory_space<vmem>>, vector<32x128xf32>
    %cst = arith.constant dense<0.000000e+00> : vector<8x128xf32>
    %2 = tpu.matmul %0, %1, %cst {dimension_numbers = #tpu.dot_dimension_numbers<[1], [0], [0], [1], [0, 0, 1, 1], [], []>} : vector<8x32xf32>, vector<32x128xf32>, vector<8x128xf32> -> vector<8x128xf32>
    %c0_3 = arith.constant 0 : index
    %c0_4 = arith.constant 0 : index
    %3 = vector.load %arg4[%c0_3, %c0_4] : memref<32x128xf32, #tpu.memory_space<vmem>>, vector<32x128xf32>
    %cst_5 = arith.constant dense<0.000000e+00> : vector<8x128xf32>
    %4 = tpu.matmul %0, %3, %cst_5 {dimension_numbers = #tpu.dot_dimension_numbers<[1], [0], [0], [1], [0, 0, 1, 1], [], []>} : vector<8x32xf32>, vector<32x128xf32>, vector<8x128xf32> -> vector<8x128xf32>
    %5 = arith.negf %2 : vector<8x128xf32>
    %6 = math.exp %5 : vector<8x128xf32>
    %cst_6 = arith.constant 1.000000e+00 : f32
    %7 = vector.broadcast %cst_6 : f32 to vector<8x128xf32>
    %8 = arith.addf %7, %6 : vector<8x128xf32>
    %9 = arith.divf %7, %8 : vector<8x128xf32>
    %10 = arith.mulf %2, %9 : vector<8x128xf32>
    %11 = arith.mulf %10, %4 : vector<8x128xf32>
    %c0_7 = arith.constant 0 : index
    %c0_8 = arith.constant 0 : index
    %12 = vector.load %arg5[%c0_7, %c0_8] : memref<128x32xf32, #tpu.memory_space<vmem>>, vector<128x32xf32>
    %cst_9 = arith.constant dense<0.000000e+00> : vector<8x32xf32>
    %13 = tpu.matmul %11, %12, %cst_9 {dimension_numbers = #tpu.dot_dimension_numbers<[1], [0], [0], [1], [0, 0, 1, 1], [], []>} : vector<8x128xf32>, vector<128x32xf32>, vector<8x32xf32> -> vector<8x32xf32>
    %c0_10 = arith.constant 0 : index
    %c0_11 = arith.constant 0 : index
    %14 = vector.load %arg6[%c0_10, %c0_11] : memref<8x32xf32, #tpu.memory_space<vmem>>, vector<8x32xf32>
    tpu.vector_store %arg6[%c0_10, %c0_11], %13 {strides = array<i32>} : memref<8x32xf32, #tpu.memory_space<vmem>>, vector<8x32xf32>,
    return
  }
  func.func @transform_0(%arg0: i32, %arg1: i32) -> (i32, i32) {
    %c0_i32 = arith.constant 0 : i32
    %c0_i32_0 = arith.constant 0 : i32
    return %arg0, %c0_i32 : i32, i32
  }
  func.func @transform_1(%arg0: i32, %arg1: i32) -> (i32, i32) {
    %c0_i32 = arith.constant 0 : i32
    %c0_i32_0 = arith.constant 0 : i32
    return %c0_i32, %arg1 : i32, i32
  }
  func.func @transform_2(%arg0: i32, %arg1: i32) -> (i32, i32) {
    %c0_i32 = arith.constant 0 : i32
    %c0_i32_0 = arith.constant 0 : i32
    return %c0_i32, %arg1 : i32, i32
  }
  func.func @transform_3(%arg0: i32, %arg1: i32) -> (i32, i32) {
    %c0_i32 = arith.constant 0 : i32
    %c0_i32_0 = arith.constant 0 : i32
    return %arg1, %c0_i32 : i32, i32
  }
  func.func @transform_4(%arg0: i32, %arg1: i32) -> (i32, i32) {
    %c0_i32 = arith.constant 0 : i32
    %c0_i32_0 = arith.constant 0 : i32
    return %arg0, %c0_i32 : i32, i32
  }
}

</mosaic_0001>

<bundles_post_ra>
// kernel: _mixtral_mlp_impl.1
= control target key start
LH: loop header
LB: loop body
LE: loop exit
PB: predicated region body
PF: predicated region fallthrough
CT: control target
= control target key end

     0   :  { %s286_s0 = inlined_call_operand.vmem [shape: f32[8,32], index: 0, kind: input, shape index: {}]   ;;  %s287_s1 = inlined_call_operand.vmem [shape: f32[32,128], index: 1, kind: input, shape index: {}]   ;;  %s288_s2 = inlined_call_operand.vmem [shape: f32[32,128], index: 2, kind: input, shape index: {}]   ;;  %s289_s3 = inlined_call_operand.vmem [shape: f32[128,32], index: 3, kind: input, shape index: {}]   ;;  %s290_s4 = inlined_call_operand.hbm [shape: f32[8,32], index: 4, kind: output, shape index: {}]  }
   0x1   :  { %v22_v0 = vld [vmem:[%s287_s1 + $0x18] sm:$0xff]  ;;  %v21_v1 = vld [vmem:[%s287_s1 + $0x10] sm:$0xff]  ;;  %v20_v3 = vld [vmem:[%s287_s1 + $0x8] sm:$0xff] }
   0x2   :  { %39 = vmatpush.msra.mxu0 %v22_v0  ;;  %v50_v2 = vld [vmem:[%s288_s2 + $0x18] sm:$0xff]  ;;  %v49_v4 = vld [vmem:[%s288_s2 + $0x10] sm:$0xff]  ;;  %v48_v5 = vld [vmem:[%s288_s2 + $0x8] sm:$0xff] }
   0x3   :  { %63 = vmatpush.msra.mxu1 %v50_v2 }
   0x4   :  { %40 = vmatpush.msra.mxu0 %v21_v1 }
   0x5   :  { %9 = vsyncpa [#allocation4], 0  ;;  %v19_v6 = vld [vmem:[%s287_s1] sm:$0xff]  ;;  %64 = vmatpush.msra.mxu1 %v49_v4  ;;  %vm23_vm0 = vcmask 261120   ;;  %v107_v9 = vld [vmem:[%s289_s3 + $0x78] sm:$0xff] }
   0x6   :  { %41 = vmatpush.msra.mxu0 %v20_v3  ;;  %v18_v7 = vld [vmem:[%s286_s0] sm:$0xff]  ;;  %108 = vmatpush.msra.mxu2 %v107_v9  ;;  %v106_v10 = vld [vmem:[%s289_s3 + $0x70] sm:$0xff]  ;;  %v105_v11 = vld [vmem:[%s289_s3 + $0x68] sm:$0xff] }
   0x7   :  { %v47_v8 = vld [vmem:[%s288_s2] sm:$0xff]  ;;  %65 = vmatpush.msra.mxu1 %v48_v5  ;;  %v103_v13 = vld [vmem:[%s289_s3 + $0x58] sm:$0xff]  ;;  %v102_v14 = vld [vmem:[%s289_s3 + $0x50] sm:$0xff]  ;;  %s136_s2 = sshll.u32 %s290_s4, 4  ;;  %s137_s2 = int_to_ptr.hbm [resolvable:$true] %s136_s2 }
   0x8   :  { %42 = vmatpush.msra.mxu0 %v19_v6  ;;  %109 = vmatpush.msra.mxu2 %v106_v10  ;;  %v104_v12 = vld [vmem:[%s289_s3 + $0x60] sm:$0xff]  ;;  %v101_v15 = vld [vmem:[%s289_s3 + $0x48] sm:$0xff]  ;;  %v99_v17 = vld [vmem:[%s289_s3 + $0x38] sm:$0xff] }
   0x9   :  { %145 = vmatmul.msk.f32.vlgmr.msra.gmra.mxu0 %vm23_vm0, %v18_v7  ;;  %66 = vmatpush.msra.mxu1 %v47_v8  ;;  %v100_v16 = vld [vmem:[%s289_s3 + $0x40] sm:$0xff]  ;;  %v98_v18 = vld [vmem:[%s289_s3 + $0x30] sm:$0xff]  ;;  %v97_v19 = vld [vmem:[%s289_s3 + $0x28] sm:$0xff] }
   0xa   :  { %146 = vmatmul.msk.f32.vlgmr.msra.gmra.mxu1 %vm23_vm0, %v18_v7  ;;  %110 = vmatpush.msra.mxu2 %v105_v11  ;;  %v96_v20 = vld [vmem:[%s289_s3 + $0x20] sm:$0xff]  ;;  %v95_v21 = vld [vmem:[%s289_s3 + $0x18] sm:$0xff]  ;;  %v94_v22 = vld [vmem:[%s289_s3 + $0x10] sm:$0xff] }
   0xb   :  { %v93_v23 = vld [vmem:[%s289_s3 + $0x8] sm:$0xff]  ;;  %v92_v24 = vld [vmem:[%s289_s3] sm:$0xff]  ;;  %s179_s3 = smov [#allocation3]  }
   0xc   :  { %111 = vmatpush.msra.mxu2 %v104_v12  ;;  %s134_s9 = sshll.u32 %s179_s3, 4  ;;  %s135_s9 = int_to_ptr.vmem [resolvable:$true] %s134_s9 }
   0xe   :  { %112 = vmatpush.msra.mxu2 %v103_v13 }
  0x10   :  { %113 = vmatpush.msra.mxu2 %v102_v14 }
  0x12   :  { %114 = vmatpush.msra.mxu2 %v101_v15 }
  0x14   :  { %115 = vmatpush.msra.mxu2 %v100_v16 }
  0x16   :  { %116 = vmatpush.msra.mxu2 %v99_v17 }
  0x18   :  { %117 = vmatpush.msra.mxu2 %v98_v18 }
  0x1a   :  { %118 = vmatpush.msra.mxu2 %v97_v19 }
  0x1c   :  { %119 = vmatpush.msra.mxu2 %v96_v20 }
  0x1e   :  { %120 = vmatpush.msra.mxu2 %v95_v21 }
  0x20   :  { %121 = vmatpush.msra.mxu2 %v94_v22 }
  0x22   :  { %122 = vmatpush.msra.mxu2 %v93_v23 }
  0x24   :  { %123 = vmatpush.msra.mxu2 %v92_v24 }
  0x86   :  { %v44_v25 = vpop.f32.mrf.mxu0 }
  0x87   :  { %v147_v26 = vmul.f32 -1.442695, %v44_v25  ;;  %v68_v39 = vpop.f32.mrf.mxu1 }
  0x89   :  { %149 = vpow2.f32 %v147_v26 }
  0x8f   :  { %v150_v27 = vpop.eup %149 }
  0x90   :  { %v74_v28 = vadd.f32 1.0, %v150_v27 }
  0x92   :  { %151 = vrcp.f32 %v74_v28  ;;  %v86_v32 = vand.u32 2147483648, %v74_v28  ;;  %v84_v34 = vand.u32 2147483647, %v74_v28  ;;  %vm80_vm2 = vweird.f32 %v74_v28 }
  0x94   :  { %v87_v36 = vor.u32 1.1754944e-38, %v86_v32  ;;  %vm85_vm4 = vcmp.eq.f32.partialorder %v84_v34, 8.507059e+37 }
  0x98   :  { %v152_v29 = vpop.eup %151 }
  0x99   :  { %v76_v30 = vmul.f32 %v152_v29, %v74_v28  ;;  %vm81_vm1 = vweird.f32 %v152_v29 }
  0x9a   :  { %vm82_vm3 = vmor %vm80_vm2, %vm81_vm1 }
  0x9b   :  { %v77_v31 = vsub.f32 1.0, %v76_v30 }
  0x9d   :  { %v78_v33 = vmul.f32 %v152_v29, %v77_v31 }
  0x9f   :  { %v79_v35 = vadd.f32 %v152_v29, %v78_v33 }
  0xa1   :  { %v83_v37 = vsel %vm82_vm3, %v152_v29, %v79_v35 }
  0xa2   :  { %v88_v38 = vsel %vm85_vm4, %v87_v36, %v83_v37 }
  0xa3   :  { %v90_v40 = vmul.f32 %v88_v38, %v44_v25 }
  0xa5   :  { %v91_v41 = vmul.f32 %v90_v40, %v68_v39 }
  0xa7   :  { %124 = vmatmul.f32.vlgmr.msra.gmra.mxu2 %v91_v41 }
 0x12a   :  { %v125_v42 = vpop.f32.mrf.mxu2 }
 0x12b   :  { %128 = vst.msk [vmem:[#allocation3] sm:$0xff] %vm23_vm0, %v125_v42 }
 0x12c   :  { %139 = dma.vmem_to_hbm [thread:$0]  %s135_s9, 128, %s137_s2, [#allocation4]  }
 0x12d   :  { %177 = dma.done.wait [#allocation4], 128  }
 0x12e   :  { %178 = vsyncadd [#allocation4], 4294967168 }
 0x12f   :  { %144 = vsyncpa [#allocation4], 1 }

</bundles_post_ra>
